<compile_context>
chip_gen: v7x
topology: tpu7x:2x2x1
jax: 0.10.0
libtpu: 0.0.40
codegen_flags: <defaults>
</compile_context>

<pallas_src>
import jax
import jax.numpy as jnp
from jax import lax
from jax.experimental import pallas as pl
from jax.experimental.pallas import tpu as pltpu


def netvlad_kernel(x_ref, w_ref, cent_ref, soft_ref, res_ref, vlad_ref, vlad_acc):
    p = pl.program_id(1)

    @pl.when(p == 0)
    def _():
        vlad_acc[...] = jnp.zeros_like(vlad_acc)

    x = x_ref[0].astype(jnp.float32)            # (C, TP)
    w = w_ref[...].astype(jnp.float32)          # (K, C)
    cent = cent_ref[...].astype(jnp.float32)    # (K, C)

    # F.normalize(x, p=2, dim=1): per-pixel L2 norm over channels.
    # rsqrt(max(sum_sq, eps^2)) == 1 / max(norm, eps) with eps = 1e-12, and the
    # rsqrt goes through the (otherwise idle) EUP slot instead of a VALU divide.
    sum_sq = jnp.sum(x * x, axis=0, keepdims=True)           # (1, TP)
    x_n = x * lax.rsqrt(jnp.maximum(sum_sq, 1e-24))          # (C, TP)

    # 1x1 conv (no bias): (K, C) @ (C, TP) soft-assignment logits on the MXU.
    logits = jnp.dot(w, x_n, preferred_element_type=jnp.float32)   # (K, TP)

    # Softmax over clusters (axis 0).  EUP approximate reciprocal + one
    # Newton-Raphson refinement keeps ~f32 accuracy off the divide path.
    m = jnp.max(logits, axis=0, keepdims=True)               # (1, TP)
    e = jnp.exp(logits - m)                                  # (K, TP)
    denom = jnp.sum(e, axis=0, keepdims=True)                # (1, TP)
    r = pl.reciprocal(denom, approx=True)
    r = r * (2.0 - denom * r)                                # NR refinement
    soft = e * r                                             # (K, TP)
    soft_ref[0] = soft.astype(soft_ref.dtype)

    # Weighted residual tile (the module returns the in-place-scaled residual).
    weighted = (x_n[None, :, :] - cent[:, :, None]) * soft[:, None, :]  # (K,C,TP)
    res_ref[0] = weighted.astype(res_ref.dtype)

    # vlad contribution via MXU instead of reducing the (K, C, TP) tensor:
    #   vlad[k,c] = sum_p soft[k,p] * x_n[c,p] - cent[k,c] * sum_p soft[k,p]
    sw = lax.dot_general(soft, x_n, (((1,), (1,)), ((), ())),
                         preferred_element_type=jnp.float32)  # (K, C)
    ssum = jnp.sum(soft, axis=1, keepdims=True)               # (K, 1)
    vlad_acc[...] += sw - cent * ssum

    @pl.when(p == pl.num_programs(1) - 1)
    def _():
        vlad_ref[0] = vlad_acc[...].astype(vlad_ref.dtype)


def _pick_pixel_tile(P, max_tp=128):
    """Largest multiple of 128 that divides P and is <= max_tp; fallback: P."""
    best = None
    tp = 128
    while tp <= min(P, max_tp):
        if P % tp == 0:
            best = tp
        tp += 128
    return best if best is not None else P


def netvlad_pallas(x_nchw, conv_w, centroids, *, tp=None,
                   soft_dtype=jnp.float32, res_dtype=jnp.float32,
                   vlad_dtype=jnp.float32):
    """x_nchw: (N, C, H, W); conv_w: (K, C); centroids: (K, C)."""
    N, C, H, W = x_nchw.shape
    K = conv_w.shape[0]
    P = H * W
    # Keep the input dtype through the HBM->VMEM DMA (upcast inside the
    # kernel); bf16 activations halve the read traffic with no wrapper cast.
    x_flat = x_nchw.reshape(N, C, P)

    # Pixel tile: lane-dense (multiple of 128) and small enough that the
    # double-buffered (K, C, TP) residual tile fits every generation's VMEM
    # (TP=128 -> 2 x 16 MiB at K=64, C=512; bump max_tp to 256 on v5e/v6e).
    if tp is None:
        tp = _pick_pixel_tile(P, max_tp=128)
    assert P % tp == 0, "pixel tile must divide H*W"
    n_ptiles = P // tp

    def _isz(dt):
        return jnp.dtype(dt).itemsize

    vmem_needed = (
        2 * (K * C * tp * _isz(res_dtype)        # residual tile (double-buffered)
             + K * tp * _isz(soft_dtype)         # soft-assign tile
             + C * tp * _isz(x_flat.dtype)       # x tile
             + K * C * _isz(vlad_dtype))         # vlad output block
        + 2 * 2 * K * C * 4                      # conv weight + centroids
        + K * C * 4)                             # vlad accumulator scratch
    vmem_limit = int(min(56 << 20, max(32 << 20, vmem_needed + (8 << 20))))

    soft, res, vlad = pl.pallas_call(
        netvlad_kernel,
        out_shape=(
            jax.ShapeDtypeStruct((N, K, P), soft_dtype),
            jax.ShapeDtypeStruct((N, K, C, P), res_dtype),
            jax.ShapeDtypeStruct((N, K, C), vlad_dtype),
        ),
        grid_spec=pltpu.PrefetchScalarGridSpec(
            num_scalar_prefetch=0,
            grid=(N, n_ptiles),
            in_specs=[
                pl.BlockSpec((1, C, tp), lambda n, p: (n, 0, p)),
                pl.BlockSpec((K, C), lambda n, p: (0, 0)),
                pl.BlockSpec((K, C), lambda n, p: (0, 0)),
            ],
            out_specs=[
                pl.BlockSpec((1, K, tp), lambda n, p: (n, 0, p)),
                pl.BlockSpec((1, K, C, tp), lambda n, p: (n, 0, 0, p)),
                pl.BlockSpec((1, K, C), lambda n, p: (n, 0, 0)),
            ],
            scratch_shapes=[pltpu.VMEM((K, C), jnp.float32)],
        ),
        compiler_params=pltpu.CompilerParams(
            dimension_semantics=("parallel", "arbitrary"),
            vmem_limit_bytes=vmem_limit,
        ),
    )(x_flat, conv_w, centroids)

    return soft.reshape(N, K, H, W), res, vlad


def netvlad_reference(x_nchw, conv_w, centroids):
    """Pure-JAX reference mirroring the PyTorch forward exactly."""
    N, C, H, W = x_nchw.shape
    K = conv_w.shape[0]
    P = H * W
    norm = jnp.sqrt(jnp.sum(x_nchw * x_nchw, axis=1, keepdims=True))
    x_n = x_nchw / jnp.maximum(norm, 1e-12)
    logits = jnp.einsum("kc,nchw->nkhw", conv_w, x_n).reshape(N, K, P)
    soft = jax.nn.softmax(logits, axis=1)
    return_soft = soft.reshape(N, K, H, W)
    x_flat = x_n.reshape(N, C, P)
    resid = x_flat[:, None, :, :] - centroids[None, :, :, None]
    weighted = resid * soft[:, :, None, :]
    vlad = jnp.sum(weighted, axis=-1)
    return return_soft, weighted, vlad


if __name__ == "__main__":
    # Small shapes consistent with the module (num_clusters=K, dim=C).
    # H=W=16 -> P=256, i.e. two lane-dense 128-pixel tiles per batch element,
    # which also exercises the cross-tile vlad accumulation.
    N, C, H, W = 2, 16, 16, 16
    K = 8

    key = jax.random.PRNGKey(0)
    kx, kw, kc = jax.random.split(key, 3)
    x = jax.random.normal(kx, (N, C, H, W), dtype=jnp.float32)
    # Conv2d(dim, K, 1, bias=False) weight -> (K, C); centroids ~ U[0, 1).
    conv_w = jax.random.normal(kw, (K, C), dtype=jnp.float32) * 0.1
    centroids = jax.random.uniform(kc, (K, C), dtype=jnp.float32)

    out_soft, out_res, out_vlad = netvlad_pallas(x, conv_w, centroids)
    jax.block_until_ready((out_soft, out_res, out_vlad))

    ref_soft, ref_res, ref_vlad = netvlad_reference(x, conv_w, centroids)
    assert out_soft.shape == ref_soft.shape
    assert out_res.shape == ref_res.shape
    assert out_vlad.shape == ref_vlad.shape
    # Slightly relaxed tolerances: EUP rsqrt/reciprocal(+NR) and the algebraic
    # vlad reformulation round differently than the straight-line reference.
    assert jnp.allclose(out_soft, ref_soft, atol=1e-4, rtol=1e-4)
    assert jnp.allclose(out_res, ref_res, atol=1e-4, rtol=1e-4)
    assert jnp.allclose(out_vlad, ref_vlad, atol=1e-3, rtol=1e-3)

    print("KERNEL_OK")
</pallas_src>

<mosaic_0001>
module attributes {stable_mosaic.version = 11 : i64} {
  func.func @netvlad_kernel(%arg0: i32, %arg1: i32, %arg2: memref<1x16x128xf32, #tpu.memory_space<vmem>>, %arg3: memref<8x16xf32, #tpu.memory_space<vmem>>, %arg4: memref<8x16xf32, #tpu.memory_space<vmem>>, %arg5: memref<1x8x128xf32, #tpu.memory_space<vmem>>, %arg6: memref<1x8x16x128xf32, #tpu.memory_space<vmem>>, %arg7: memref<1x8x16xf32, #tpu.memory_space<vmem>>, %arg8: memref<8x16xf32, #tpu.memory_space<vmem>>) attributes {dimension_semantics = [#tpu.dimension_semantics<parallel>, #tpu.dimension_semantics<arbitrary>], iteration_bounds = array<i64: 2, 2>, scalar_prefetch = 0 : i64, scratch_operands = 1 : i64, tpu.core_type = #tpu.core_type<tc>, window_params = [{transform_indices = @transform_0, window_bounds = array<i64: 1, 16, 128>}, {pipeline_mode = #tpu.pipeline_mode<synchronous>, transform_indices = @transform_1, window_bounds = array<i64: 8, 16>}, {pipeline_mode = #tpu.pipeline_mode<synchronous>, transform_indices = @transform_2, window_bounds = array<i64: 8, 16>}, {transform_indices = @transform_3, window_bounds = array<i64: 1, 8, 128>}, {transform_indices = @transform_4, window_bounds = array<i64: 1, 8, 16, 128>}, {transform_indices = @transform_5, window_bounds = array<i64: 1, 8, 16>}]} {
    %c0_i32 = arith.constant 0 : i32
    %0 = arith.cmpi eq, %arg1, %c0_i32 : i32
    %1 = arith.extui %0 : i1 to i32
    %c0_i32_0 = arith.constant 0 : i32
    %2 = arith.cmpi ne, %1, %c0_i32_0 : i32
    scf.if %2 {
      %cst_26 = arith.constant 0.000000e+00 : f32
      %56 = vector.broadcast %cst_26 : f32 to vector<8x16xf32>
      %c0_27 = arith.constant 0 : index
      %c0_28 = arith.constant 0 : index
      %57 = vector.load %arg8[%c0_27, %c0_28] : memref<8x16xf32, #tpu.memory_space<vmem>>, vector<8x16xf32>
      tpu.vector_store %arg8[%c0_27, %c0_28], %56 {strides = array<i32>} : memref<8x16xf32, #tpu.memory_space<vmem>>, vector<8x16xf32>,
    } else {
    }
    %c0 = arith.constant 0 : index
    %c0_1 = arith.constant 0 : index
    %c0_2 = arith.constant 0 : index
    %3 = vector.load %arg2[%c0, %c0_1, %c0_2] : memref<1x16x128xf32, #tpu.memory_space<vmem>>, vector<1x16x128xf32>
    %4 = vector.shape_cast %3 : vector<1x16x128xf32> to vector<16x128xf32>
    %c0_3 = arith.constant 0 : index
    %c0_4 = arith.constant 0 : index
    %5 = vector.load %arg3[%c0_3, %c0_4] : memref<8x16xf32, #tpu.memory_space<vmem>>, vector<8x16xf32>
    %c0_5 = arith.constant 0 : index
    %c0_6 = arith.constant 0 : index
    %6 = vector.load %arg4[%c0_5, %c0_6] : memref<8x16xf32, #tpu.memory_space<vmem>>, vector<8x16xf32>
    %7 = arith.mulf %4, %4 : vector<16x128xf32>
    %cst = arith.constant dense<0.000000e+00> : vector<128xf32>
    %8 = vector.multi_reduction <add>, %7, %cst [0] : vector<16x128xf32> to vector<128xf32>
    %9 = vector.shape_cast %8 : vector<128xf32> to vector<1x128xf32>
    %cst_7 = arith.constant 1.000000e-24 : f32
    %10 = vector.broadcast %cst_7 : f32 to vector<1x128xf32>
    %11 = arith.maximumf %9, %10 : vector<1x128xf32>
    %12 = math.rsqrt %11 : vector<1x128xf32>
    %13 = vector.broadcast %12 : vector<1x128xf32> to vector<16x128xf32>
    %14 = arith.mulf %4, %13 : vector<16x128xf32>
    %cst_8 = arith.constant dense<0.000000e+00> : vector<8x128xf32>
    %15 = tpu.matmul %5, %14, %cst_8 {dimension_numbers = #tpu.dot_dimension_numbers<[1], [0], [0], [1], [0, 0, 1, 1], [], []>} : vector<8x16xf32>, vector<16x128xf32>, vector<8x128xf32> -> vector<8x128xf32>
    %cst_9 = arith.constant dense<0xFF800000> : vector<128xf32>
    %16 = vector.multi_reduction <maximumf>, %15, %cst_9 [0] : vector<8x128xf32> to vector<128xf32>
    %17 = vector.shape_cast %16 : vector<128xf32> to vector<1x128xf32>
    %18 = vector.broadcast %17 : vector<1x128xf32> to vector<8x128xf32>
    %19 = arith.subf %15, %18 : vector<8x128xf32>
    %20 = math.exp %19 : vector<8x128xf32>
    %cst_10 = arith.constant dense<0.000000e+00> : vector<128xf32>
    %21 = vector.multi_reduction <add>, %20, %cst_10 [0] : vector<8x128xf32> to vector<128xf32>
    %22 = vector.shape_cast %21 : vector<128xf32> to vector<1x128xf32>
    %23 = tpu.reciprocal %22 {approx = true} : vector<1x128xf32> -> vector<1x128xf32>
    %24 = arith.mulf %22, %23 : vector<1x128xf32>
    %cst_11 = arith.constant 2.000000e+00 : f32
    %25 = vector.broadcast %cst_11 : f32 to vector<1x128xf32>
    %26 = arith.subf %25, %24 : vector<1x128xf32>
    %27 = arith.mulf %23, %26 : vector<1x128xf32>
    %28 = vector.broadcast %27 : vector<1x128xf32> to vector<8x128xf32>
    %29 = arith.mulf %20, %28 : vector<8x128xf32>
    %c0_12 = arith.constant 0 : index
    %c0_13 = arith.constant 0 : index
    %c0_14 = arith.constant 0 : index
    %30 = vector.load %arg5[%c0_12, %c0_13, %c0_14] : memref<1x8x128xf32, #tpu.memory_space<vmem>>, vector<1x8x128xf32>
    %31 = vector.shape_cast %30 : vector<1x8x128xf32> to vector<8x128xf32>
    %32 = vector.shape_cast %29 : vector<8x128xf32> to vector<1x8x128xf32>
    tpu.vector_store %arg5[%c0_12, %c0_13, %c0_14], %32 {strides = array<i32>} : memref<1x8x128xf32, #tpu.memory_space<vmem>>, vector<1x8x128xf32>,
    %33 = vector.shape_cast %14 : vector<16x128xf32> to vector<1x16x128xf32>
    %34 = vector.shape_cast %6 : vector<8x16xf32> to vector<8x16x1xf32>
    %35 = vector.broadcast %33 : vector<1x16x128xf32> to vector<8x16x128xf32>
    %36 = vector.broadcast %34 : vector<8x16x1xf32> to vector<8x16x128xf32>
    %37 = arith.subf %35, %36 : vector<8x16x128xf32>
    %38 = vector.shape_cast %29 : vector<8x128xf32> to vector<8x1x128xf32>
    %39 = vector.broadcast %38 : vector<8x1x128xf32> to vector<8x16x128xf32>
    %40 = arith.mulf %37, %39 : vector<8x16x128xf32>
    %c0_15 = arith.constant 0 : index
    %c0_16 = arith.constant 0 : index
    %c0_17 = arith.constant 0 : index
    %c0_18 = arith.constant 0 : index
    %41 = vector.load %arg6[%c0_15, %c0_16, %c0_17, %c0_18] : memref<1x8x16x128xf32, #tpu.memory_space<vmem>>, vector<1x8x16x128xf32>
    %42 = vector.shape_cast %41 : vector<1x8x16x128xf32> to vector<8x16x128xf32>
    %43 = vector.shape_cast %40 : vector<8x16x128xf32> to vector<1x8x16x128xf32>
    tpu.vector_store %arg6[%c0_15, %c0_16, %c0_17, %c0_18], %43 {strides = array<i32>} : memref<1x8x16x128xf32, #tpu.memory_space<vmem>>, vector<1x8x16x128xf32>,
    %cst_19 = arith.constant dense<0.000000e+00> : vector<8x16xf32>
    %44 = tpu.matmul %29, %14, %cst_19 {dimension_numbers = #tpu.dot_dimension_numbers<[1], [1], [0], [0], [0, 0, 1, 0], [], []>} : vector<8x128xf32>, vector<16x128xf32>, vector<8x16xf32> -> vector<8x16xf32>
    %cst_20 = arith.constant dense<0.000000e+00> : vector<8xf32>
    %45 = vector.multi_reduction <add>, %29, %cst_20 [1] : vector<8x128xf32> to vector<8xf32>
    %46 = vector.shape_cast %45 : vector<8xf32> to vector<8x1xf32>
    %c0_21 = arith.constant 0 : index
    %c0_22 = arith.constant 0 : index
    %47 = vector.load %arg8[%c0_21, %c0_22] : memref<8x16xf32, #tpu.memory_space<vmem>>, vector<8x16xf32>
    %48 = vector.broadcast %46 : vector<8x1xf32> to vector<8x16xf32>
    %49 = arith.mulf %6, %48 : vector<8x16xf32>
    %50 = arith.subf %44, %49 : vector<8x16xf32>
    %51 = arith.addf %47, %50 : vector<8x16xf32>
    %c0_23 = arith.constant 0 : index
    %c0_24 = arith.constant 0 : index
    %52 = vector.load %arg8[%c0_23, %c0_24] : memref<8x16xf32, #tpu.memory_space<vmem>>, vector<8x16xf32>
    tpu.vector_store %arg8[%c0_23, %c0_24], %51 {strides = array<i32>} : memref<8x16xf32, #tpu.memory_space<vmem>>, vector<8x16xf32>,
    %c1_i32 = arith.constant 1 : i32
    %53 = arith.cmpi eq, %arg1, %c1_i32 : i32
    %54 = arith.extui %53 : i1 to i32
    %c0_i32_25 = arith.constant 0 : i32
    %55 = arith.cmpi ne, %54, %c0_i32_25 : i32
    scf.if %55 {
      %c0_26 = arith.constant 0 : index
      %c0_27 = arith.constant 0 : index
      %56 = vector.load %arg8[%c0_26, %c0_27] : memref<8x16xf32, #tpu.memory_space<vmem>>, vector<8x16xf32>
      %c0_28 = arith.constant 0 : index
      %c0_29 = arith.constant 0 : index
      %c0_30 = arith.constant 0 : index
      %57 = vector.load %arg7[%c0_28, %c0_29, %c0_30] : memref<1x8x16xf32, #tpu.memory_space<vmem>>, vector<1x8x16xf32>
      %58 = vector.shape_cast %57 : vector<1x8x16xf32> to vector<8x16xf32>
      %59 = vector.shape_cast %56 : vector<8x16xf32> to vector<1x8x16xf32>
      tpu.vector_store %arg7[%c0_28, %c0_29, %c0_30], %59 {strides = array<i32>} : memref<1x8x16xf32, #tpu.memory_space<vmem>>, vector<1x8x16xf32>,
    } else {
    }
    return
  }
  func.func @transform_0(%arg0: i32, %arg1: i32) -> (i32, i32, i32) {
    %c0_i32 = arith.constant 0 : i32
    %c0_i32_0 = arith.constant 0 : i32
    return %arg0, %c0_i32, %arg1 : i32, i32, i32
  }
  func.func @transform_1(%arg0: i32, %arg1: i32) -> (i32, i32) {
    %c0_i32 = arith.constant 0 : i32
    %c0_i32_0 = arith.constant 0 : i32
    %c0_i32_1 = arith.constant 0 : i32
    return %c0_i32, %c0_i32_0 : i32, i32
  }
  func.func @transform_2(%arg0: i32, %arg1: i32) -> (i32, i32) {
    %c0_i32 = arith.constant 0 : i32
    %c0_i32_0 = arith.constant 0 : i32
    %c0_i32_1 = arith.constant 0 : i32
    return %c0_i32, %c0_i32_0 : i32, i32
  }
  func.func @transform_3(%arg0: i32, %arg1: i32) -> (i32, i32, i32) {
    %c0_i32 = arith.constant 0 : i32
    %c0_i32_0 = arith.constant 0 : i32
    return %arg0, %c0_i32, %arg1 : i32, i32, i32
  }
  func.func @transform_4(%arg0: i32, %arg1: i32) -> (i32, i32, i32, i32) {
    %c0_i32 = arith.constant 0 : i32
    %c0_i32_0 = arith.constant 0 : i32
    %c0_i32_1 = arith.constant 0 : i32
    return %arg0, %c0_i32, %c0_i32_0, %arg1 : i32, i32, i32, i32
  }
  func.func @transform_5(%arg0: i32, %arg1: i32) -> (i32, i32, i32) {
    %c0_i32 = arith.constant 0 : i32
    %c0_i32_0 = arith.constant 0 : i32
    %c0_i32_1 = arith.constant 0 : i32
    return %arg0, %c0_i32, %c0_i32_0 : i32, i32, i32
  }
}

</mosaic_0001>

<bundles_post_ra>
// kernel: tpu_custom_call.1
= control target key start
LH: loop header
LB: loop body
LE: loop exit
PB: predicated region body
PF: predicated region fallthrough
CT: control target
= control target key end

     0   :  { %s1983_s0 = inlined_call_operand.hbm [shape: f32[2,16,256], index: 0, kind: input, shape index: {}]   ;;  %s1984_s1 = inlined_call_operand.hbm [shape: f32[8,16], index: 1, kind: input, shape index: {}]   ;;  %s1985_s2 = inlined_call_operand.hbm [shape: f32[8,16], index: 2, kind: input, shape index: {}]   ;;  %s1986_s3 = inlined_call_operand.hbm [shape: f32[2,8,256], index: 3, kind: output, shape index: {0}]   ;;  %s1987_s4 = inlined_call_operand.hbm [shape: f32[2,8,16,256], index: 4, kind: output, shape index: {1}]   ;;  %s1988_s5 = inlined_call_operand.hbm [shape: f32[2,8,16], index: 5, kind: output, shape index: {2}]  }
   0x1   :  { %2008 = sst [smem:[#allocation27_spill]] %s1983_s0 }
   0x2   :  { %2009 = sst [smem:[#allocation28_spill]] %s1984_s1 }
   0x3   :  { %2010 = sst [smem:[#allocation29_spill]] %s1985_s2 }
   0x4   :  { %2011 = sst [smem:[#allocation30_spill]] %s1987_s4 }
   0x5   :  { %11 = vsyncpa [#allocation4], 0 }
   0x6   :  { %13 = vsyncpa [#allocation4 + $0x1], 0 }
   0x7   :  { %14 = vsyncpa [#allocation7], 0 }
   0x8   :  { %15 = vsyncpa [#allocation5], 0 }
   0x9   :  { %17 = vsyncpa [#allocation5 + $0x1], 0 }
   0xa   :  { %18 = vsyncpa [#allocation11], 0 }
   0xb   :  { %20 = vsyncpa [#allocation11 + $0x1], 0  ;;  %s1485_s18 = smov 0   ;;  %s1487_s19 = smov 0  }
   0xc   :  { %s1489_s20 = smov 0   ;;  %s1491_s21 = smov 0  }
   0xd   :  { %s1493_s22 = smov 0   ;;  %s1495_s23 = smov 0  }
   0xe   :  { %s1497_s24 = smov 0   ;;  %s1499_s25 = smov 0  }
   0xf   :  { %s1501_s26 = smov 0   ;;  %s1503_s27 = smov 0  }
  0x10   :  { %s1505_s28 = smov 0  }
  0x11 LB: > { %2012 = sst [smem:[#allocation18_spill]] %s1408_s21  ;;  %s1541_s29 = sadd.s32 4294967295, %s1436_s28   ;;  %s1436_s28 = sphi %s1505_s28, %s26_s28   ;;  %s1432_s27 = sphi %s1503_s27, %s2064_s27   ;;  %s1428_s26 = sphi %s1501_s26, %s2063_s26   ;;  %s1424_s25 = sphi %s1499_s25, %s2054_s25   ;;  %s1420_s24 = sphi %s1497_s24, %s2053_s24   ;;  %s1416_s23 = sphi %s1495_s23, %s2062_s23   ;;  %s1412_s22 = sphi %s1493_s22, %s2061_s22   ;;  %s1408_s21 = sphi %s1491_s21, %s2060_s21   ;;  %s1404_s20 = sphi %s1489_s20, %s2059_s20   ;;  %s1400_s19 = sphi %s1487_s19, %s2058_s19   ;;  %s1396_s18 = sphi %s1485_s18, %s2057_s18  }
  0x12   : > { %2013 = sst [smem:[#allocation19_spill]] %s1428_s26  ;;  %s1991_s30 = sadd.s32 4294967294, %s1436_s28  }
  0x13   : > { %2014 = sst [smem:[#allocation20_spill]] %s1432_s27  ;;  %p54_p0 = scmp.ne.s32.totalorder %s1416_s23, %s1412_s22 }
  0x14   : > { %2015 = sst [smem:[#allocation21_spill]] %s1436_s28  ;;  %p55_p1 = scmp.eq.s32.totalorder %s1436_s28, 0 }
  0x15   : > { %p60_p2 = scmp.ne.s32.totalorder %s1412_s22, %s1408_s21  ;;  %p1989_p3 = scmp.eq.s32.totalorder %s1541_s29, 0 }
  0x16   : > { %p128_p4 = scmp.eq.s32.totalorder %s1541_s29, 3  ;;  %p1552_p5 = por %p55_p1, %p54_p0 }
  0x17   : > { %p134_p6 = scmp.eq.s32.totalorder %s1991_s30, 3  ;;  %p1560_p7 = por %p1989_p3, %p60_p2 }
  0x18   : > { %p1564_p8 = por %p128_p4, %p54_p0  ;;  %p181_p10 = scmp.ne.s32.totalorder %s1404_s20, %s1400_s19 }
  0x19   : > { %s2017_s8 = scalar_select %p1560_p7, 1, 0 }
  0x1a   : > { %s2018_s9 = scalar_select %p1564_p8, 1, 0 }
  0x1b   : > { %p1568_p9 = por %p134_p6, %p60_p2  ;;  %p187_p11 = scmp.ne.s32.totalorder %s1400_s19, %s1396_s18 }
  0x1c   : > { %p957_p12 = scmp.ge.s32.totalorder %s1436_s28, 1  ;;  %p195_p13 = scmp.lt.s32.totalorder %s1436_s28, 5 }
  0x1d   : > { %s2019_s10 = scalar_select %p1568_p9, 1, 0 }
  0x1e   : > { %p1579_p1 = por %p181_p10, %p128_p4  ;;  %p1583_p3 = por %p187_p11, %p134_p6 }
  0x1f   : > { %2020 = sst [smem:[#allocation22_spill]] %s2019_s10  ;;  %p1587_p0 = pnand %p957_p12, %p195_p13 }
  0x20   : > { %s2021_s12 = scalar_select %p1579_p1, 1, 0 }
  0x21   : > { %s2023_s13 = scalar_select %p1583_p3, 1, 0 }
  0x22   : > { %2022 = sst [smem:[#allocation23_spill]] %s2021_s12  ;;  %p1026_p2 = pneg %p1587_p0 }
  0x23   : > { %2024 = sst [smem:[#allocation24_spill]] %s2023_s13  ;;  %s1438_s15 = smov [#allocation6]  }
  0x24   : > { %s2025_s14 = scalar_select %p1587_p0, 1, 0 }
  0x25   : > { %s208_s16 = sshll.u32 %s1438_s15, 4  ;;  %p1049_p9 = scmp.lt.s32.totalorder %s1436_s28, 4  ;;  %s209_s16 = int_to_ptr.vmem [resolvable:$true] %s208_s16 }
  0x26   : > { %p2026_p8 = scmp.eq.s32.totalorder %s1541_s29, 0  ;;  %s1439_s30 = smov [#allocation8]  }
  0x27   : > { %p1602_p6 = pnand %p1049_p9, %p1552_p5  ;;  %s219_s6 = sshll.u32 %s1439_s30, 4  ;;  %s1606_s6 = int_to_ptr.vmem [resolvable:$true] %s219_s6 }
  0x28   : > { %p1596_p4 = pnand %p1026_p2, %p2026_p8  ;;  %s2029_s1 = sld [smem:[#allocation28_spill]] }
  0x29   : > { %s2028_s18 = scalar_select %p1602_p6, 1, 0 }
  0x2a   : > { %p1162_p10 = pneg %p1596_p4 }
  0x2e   : > { %s1160_s13 = scalar_lea.hbm %s2029_s1, 128 }
  0x2f   : > { %p1161_p8 = scmp.ne.s32.totalorder %s2029_s1, %s1160_s13  ;;  %p1167_p11 = scmp.lt.u32.totalorder %s1160_s13, %s2029_s1 }
  0x31   : > { %p1163_p5 = pnand %p1162_p10, %p1161_p8 }
  0x33   : > { %p1164_p9 = pneg %p1163_p5 }
  0x35   : > { %p1169_p12 = pnand %p1167_p11, %p1164_p9 }
  0x37   : > { %1172 = shalt.err (!%p1169_p12)
}
  0x38   : > { %s1173_s30 = scalar_lea.vmem %s209_s16, 128  ;;  %p1181_p1 = scmp.lt.s32.totalorder %s209_s16, %s209_s16 }
  0x39   : > { %p1174_p13 = scmp.ne.s32.totalorder %s209_s16, %s1173_s30  ;;  %p1182_p7 = scmp.lt.s32.totalorder %s1173_s30, %s1173_s30 }
  0x3b   : > { %p1176_p2 = pnand %p1174_p13, %p1162_p10  ;;  %p1183_p0 = por %p1182_p7, %p1181_p1 }
  0x3d   : > { %p1177_p3 = pneg %p1176_p2 }
  0x3f   : > { %p1184_p6 = pnand %p1183_p0, %p1177_p3 }
  0x41   : > { %1187 = shalt.err (!%p1184_p6)
}
  0x42   : > { %1029 = dma.hbm_to_vmem [thread:$0]  (!%p1596_p4), %s2029_s1, 128, %s209_s16, [#allocation7]  }
  0x43   : > { %s2030_s2 = sld [smem:[#allocation29_spill]] }
  0x49   : > { %s1188_s13 = scalar_lea.hbm %s2030_s2, 128 }
  0x4a   : > { %p1189_p8 = scmp.ne.s32.totalorder %s2030_s2, %s1188_s13  ;;  %p1195_p1 = scmp.lt.u32.totalorder %s1188_s13, %s2030_s2 }
  0x4c   : > { %p1191_p7 = pnand %p1189_p8, %p1162_p10 }
  0x4e   : > { %p1192_p3 = pneg %p1191_p7 }
  0x50   : > { %p1197_p0 = pnand %p1195_p1, %p1192_p3 }
  0x52   : > { %1200 = shalt.err (!%p1197_p0)
}
  0x53   : > { %s1201_s16 = scalar_lea.vmem %s1606_s6, 128  ;;  %p1209_p11 = scmp.lt.s32.totalorder %s1606_s6, %s1606_s6 }
  0x54   : > { %p1202_p6 = scmp.ne.s32.totalorder %s1606_s6, %s1201_s16  ;;  %p1210_p12 = scmp.lt.s32.totalorder %s1201_s16, %s1201_s16 }
  0x56   : > { %p1204_p5 = pnand %p1202_p6, %p1162_p10  ;;  %p1211_p13 = por %p1210_p12, %p1209_p11 }
  0x58   : > { %p1205_p9 = pneg %p1204_p5 }
  0x5a   : > { %p1212_p2 = pnand %p1211_p13, %p1205_p9 }
  0x5c   : > { %1215 = shalt.err (!%p1212_p2)
}
  0x5d   : > { %1032 = dma.hbm_to_vmem [thread:$0]  (!%p1596_p4), %s2030_s2, 128, %s1606_s6, [#allocation7]  }
  0x5e   : > { %s35_s10 = sadd.s32 1, %s1428_s26  ;;  %s38_s28 = sadd.s32 1, %s1432_s27 }
  0x5f   : > { %p36_p10 = scmp.ge.s32.totalorder %s35_s10, 2  ;;  %s230_s11 = sand.u32 1, %s1416_s23  }
  0x60   : > { %s962_s13 = sshll.u32 %s1432_s27, 2  ;;  %s961_s15 = sshll.u32 %s230_s11, 4 }
  0x61   : > { %s2066_s10 = smov (%p36_p10, %s35_s10), 0  ;;  %s2068_s28 = smov (!%p36_p10, %s38_s28), %s1432_s27 }
  0x62   : > { %2031 = sst [smem:[#allocation25_spill]] %s2066_s10  ;;  %s43_s17 = ssub.s32 %s1428_s26, %s2066_s10 }
  0x63   : > { %p40_p8 = scmp.ge.s32.totalorder %s2068_s28, 2  ;;  %s239_s7 = sadd.s32 %s1428_s26, %s962_s13 }
  0x64   : > { %s963_s6 = sshll.u32 %s239_s7, 7  ;;  %s234_s30 = scalar_lea.vmem [#allocation3], %s961_s15 }
  0x65   : > { %s2070_s28 = smov (%p40_p8, %s2068_s28), 0  ;;  %s242_s16 = sshll.u32 %s234_s30, 4  ;;  %s1674_s16 = int_to_ptr.vmem [resolvable:$true] %s242_s16 }
  0x66   : > { %2032 = sst [smem:[#allocation26_spill]] %s2070_s28  ;;  %s42_s12 = ssub.s32 %s1432_s27, %s2070_s28 }
  0x67   : > { %s2033_s0 = sld [smem:[#allocation27_spill]]  ;;  %s44_s10 = sor.u32 %s43_s17, %s42_s12 }
  0x68   : > { %p169_p4 = scmp.eq.s32.totalorder %s42_s12, 0  ;;  %p45_p7 = scmp.eq.s32.totalorder %s44_s10, 0 }
  0x69   : > { %s2034_s13 = sadd.s32 1, %s1404_s20  ;;  %s2035_s15 = sadd.s32 1, %s1416_s23 }
  0x6a   : > { %s1679_s26 = scalar_select %p169_p4, %s1404_s20, %s2034_s13  }
  0x6b   : > { %s1684_s7 = scalar_select %p45_p7, %s1416_s23, %s2035_s15  }
  0x6c   : > { %s1686_s30 = scalar_lea.sflag [#allocation4], %s230_s11  ;;  %p2036_p1 = scmp.ne.s32.totalorder %s2028_s18, 0 }
  0x6d   : > { %s1672_s2 = scalar_lea.hbm %s2033_s0, %s963_s6  ;;  %s1221_s6 = scalar_lea.hbm %s2033_s0, 1024 }
  0x6e   : > { %s1216_s1 = scalar_lea.hbm %s1672_s2, 256  ;;  %p1218_p0 = pneg %p2036_p1 }
  0x6f   : > { %p1217_p3 = scmp.ne.s32.totalorder %s1672_s2, %s1216_s1  ;;  %p1222_p9 = scmp.lt.u32.totalorder %s1672_s2, %s2033_s0 }
  0x70   : > { %p1223_p11 = scmp.lt.u32.totalorder %s1221_s6, %s1216_s1  ;;  %p1225_p13 = scmp.lt.u32.totalorder %s1216_s1, %s1672_s2 }
  0x71   : > { %p1219_p6 = pnand %p1218_p0, %p1217_p3 }
  0x72   : > { %p1224_p12 = por %p1223_p11, %p1222_p9 }
  0x73   : > { %p1220_p5 = pneg %p1219_p6 }
  0x74   : > { %p1226_p2 = por %p1225_p13, %p1224_p12 }
  0x76   : > { %p1227_p10 = pnand %p1226_p2, %p1220_p5 }
  0x78   : > { %1230 = shalt.err (!%p1227_p10)
}
  0x79   : > { %s1231_s11 = scalar_lea.vmem %s1674_s16, 256  ;;  %s1440_s13 = smov [#allocation3]  }
  0x7a   : > { %p1232_p8 = scmp.ne.s32.totalorder %s1674_s16, %s1231_s11  ;;  %s1236_s15 = sshll.u32 %s1440_s13, 4  ;;  %s1237_s15 = int_to_ptr.vmem [resolvable:$false] %s1236_s15 }
  0x7b   : > { %s1238_s17 = scalar_lea.vmem %s1237_s15, 512  ;;  %p1239_p3 = scmp.lt.s32.totalorder %s1674_s16, %s1237_s15 }
  0x7c   : > { %p1234_p4 = pnand %p1232_p8, %p1218_p0  ;;  %p1240_p6 = scmp.lt.s32.totalorder %s1238_s17, %s1231_s11 }
  0x7e   : > { %p1235_p7 = pneg %p1234_p4  ;;  %p1241_p9 = por %p1240_p6, %p1239_p3 }
  0x80   : > { %p1242_p11 = pnand %p1241_p9, %p1235_p7 }
  0x82   : > { %1245 = shalt.err (!%p1242_p11)
}
  0x83   : > { %s1441_s1 = smov 256   ;;  %s1442_s10 = smov 128  }
  0x84   : > { %s1443_s6 = smov 8   ;;  %p2037_p0 = scmp.ne.s32.totalorder %s2025_s14, 0 }
  0x85   : > { %1036 = dma.hbm_to_vmem [thread:$0]  (!%p2036_p1), %s1672_s2, 256, %s1674_s16, %s1686_s30, %s1441_s1, %s1442_s10, %s1443_s6  }
  0x86   : > { %254 = sbr.rel (%p2037_p0) target bundleno = 771 (0x303), region = 32  ;;  %s1717_s12 = sand.u32 (!%p2037_p0), 1, %s1412_s22  }
  0x87   : > { %s965_s21 = sshll.u32 (!%p2037_p0), %s1717_s12, 4  ;;  %s257_s11 = scalar_lea.sflag (!%p2037_p0), [#allocation4], %s1717_s12 }
  0x88   : > { %s260_s13 = scalar_lea.vmem (!%p2037_p0), [#allocation3], %s965_s21  ;;  %p2038_p5 = scmp.ne.s32.totalorder (!%p2037_p0), %s2017_s8, 0 }
  0x8d   : > { %1375 = dma.done.wait (%p2038_p5), %s257_s11, 256  }
  0x8e   : > { %1377 = vsyncadd (%p2038_p5), %s257_s11, 4294967040  ;;  %p2039_p12 = scmp.eq.s32.totalorder %s1541_s29, 0 }
  0x90   : > { %1379 = dma.done.wait (%p2039_p12), [#allocation7], 256   ;;  %p2040_p1 = pmov %p2039_p12 }
  0x91   : > { %s968_s2 = sshll.u32 %s1717_s12, 3  ;;  %s969_s14 = sshll.u32 %s1717_s12, 7 }
  0x92   : > { %1381 = vsyncadd (%p2040_p1), [#allocation7], 4294967040  ;;  %s302_s18 = sand.u32 1, %s1400_s19   ;;  %s1734_s30 = scalar_lea.vmem [#allocation9], %s968_s2 }
  0x93   : > { %s1732_s16 = sshll.u32 %s302_s18, 3  ;;  %s1736_s15 = scalar_lea.vmem [#allocation10], %s969_s14 }
  0x94   : > { %s2005_s8 = scalar_lea.vmem [#allocation12], %s1732_s16  ;;  %p971_p13 = scmp.ne.s32.totalorder %s1420_s24, 0 }
  0x95   : > { %vm309_vm0 = vcmask (!%p971_p13), 130048   ;;  %v1444_v0 = vmov (!%p971_p13), 0.0  }
  0x96   : > { %308 = sbr.rel (%p971_p13) target bundleno = 157 (0x9d), region = 48  ;;  %310 = vst.msk [vmem:[#allocation2] sm:$0xff] (!%p971_p13), %vm309_vm0, %v1444_v0 }
  0x9d PF: > { %v311_v1 = vld [vmem:[%s260_s13] sm:$0xff]  ;;  %v312_v2 = vld [vmem:[%s260_s13 + $0x8] sm:$0xff]  ;;  %v423_v3 = vlaneseq  ;;  %v1445_v4 = vmov 0.0|0.0   ;;  %vm1446_vm1 = vmmov 0   ;;  %v1447_v7 = vmov 0.0   ;;  %p973_p2 = scmp.ne.s32.totalorder %s1420_s24, 1 }
  0x9e   : > { %1004 = vmatprep.subr.bf16.mxu0 %v1445_v4  ;;  %v315_v5 = vmul.f32 %v311_v1, %v311_v1  ;;  %v316_v6 = vmul.f32 %v312_v2, %v312_v2  ;;  %994 = vmatprep.mubr.msk.f32.mxu0 %vm1446_vm1, %v1447_v7  ;;  %v1742_v10 = vld [vmem:[#allocation8] sm:$0xff]  ;;  %v313_v36 = vld [vmem:[#allocation6] sm:$0xff]  ;;  %vm328_vm2 = vcmask 130048   ;;  %v1448_v0 = vmov 1966171168  }
  0x9f   : > { %v1740_v8 = vshrl.u32 %v423_v3, 7  ;;  %1007 = vmatprep.subr.bf16.mxu1 %v1445_v4  ;;  %1001 = vmatprep.mubr.msk.f32.mxu1 %vm1446_vm1, %v1447_v7 }
  0xa0   : > { %v317_v9 = vadd.f32 %v316_v6, %v315_v5 }
  0xa1   : > { %v1745_v11 = vsub.s32 0, %v1740_v8  ;;  %v436_v12 = vsub.s32 1, %v1740_v8  ;;  %v469_v15 = vsub.s32 4, %v1740_v8  ;;  %v480_v20 = vsub.s32 5, %v1740_v8 }
  0xa2   : > { %v318_v13 = vrot.slane %v317_v9, 4  ;;  %v447_v22 = vsub.s32 2, %v1740_v8  ;;  %v491_v25 = vsub.s32 6, %v1740_v8  ;;  %v458_v30 = vsub.s32 3, %v1740_v8 }
  0xa3   : > { %v426_v14 = vrot.slane %v1742_v10, %v1745_v11  ;;  %v437_v17 = vrot.slane %v1742_v10, %v436_v12  ;;  %v470_v19 = vrot.slane %v1742_v10, %v469_v15  ;;  %v481_v24 = vrot.slane %v1742_v10, %v480_v20 }
  0xa4   : > { %v319_v16 = vadd.f32 %v318_v13, %v317_v9  ;;  %v448_v27 = vrot.slane %v1742_v10, %v447_v22  ;;  %v492_v29 = vrot.slane %v1742_v10, %v491_v25  ;;  %v459_v31 = vrot.slane %v1742_v10, %v458_v30 }
  0xa5   : > { %432 = vbcast.lane.b32.xlu1 %v426_v14, 264  ;;  %428 = vbcast.lane.b32.xlu0 %v426_v14, 256  ;;  %v502_v37 = vsub.s32 7, %v1740_v8 }
  0xa6   : > { %v320_v18 = vrot.slane %v319_v16, 2 }
  0xa7   : > { %v1770_v38 = vrot.slane %v1742_v10, %v502_v37 }
  0xa8   : > { %v321_v21 = vadd.f32 %v320_v18, %v319_v16 }
  0xa9   : > { %439 = vbcast.lane.b32.xlu1 %v437_v17, 256  ;;  %472 = vbcast.lane.b32.xlu0 %v470_v19, 256 }
  0xaa   : > { %v322_v23 = vrot.slane %v321_v21, 1 }
  0xac   : > { %v323_v26 = vadd.f32 %v322_v23, %v321_v21 }
  0xad   : > { %443 = vbcast.lane.b32.xlu1 %v437_v17, 264  ;;  %483 = vbcast.lane.b32.xlu0 %v481_v24, 256 }
  0xae   : > { %v324_v28 = vmax.f32 %v323_v26, 1e-24 }
  0xb0   : > { %1154 = vrsqrt.f32 %v324_v28 }
  0xb1   : > { %450 = vbcast.lane.b32.xlu1 %v448_v27, 256  ;;  %494 = vbcast.lane.b32.xlu0 %v492_v29, 256 }
  0xb5   : > { %454 = vbcast.lane.b32.xlu1 %v448_v27, 264 }
  0xb9   : > { %461 = vbcast.lane.b32.xlu1 %v459_v31, 256 }
  0xba   : > { %v1155_v32 = vpop.eup %1154 }
  0xbb   : > { %v1761_v33 = vmul.f32 %v1155_v32, %v311_v1  ;;  %v1763_v34 = vmul.f32 %v1155_v32, %v312_v2  ;;  %v530_v1 = vunpack.c.l.s4 %v1448_v0 }
  0xbd   : > { %v1005_v35 = vpack.c.bf16 %v1763_v34, %v1761_v33  ;;  %465 = vbcast.lane.b32.xlu1 %v459_v31, 264  ;;  %v531_v5 = vunpack.c.0.s8 %v530_v1 }
  0xbf   : > { %1006 = vmatpush3.bf16.msra.mxu0 %v1005_v35  ;;  %1009 = vmatpush3.bf16.xpose.msra.mxu1 %v1005_v35  ;;  %v534_v12 = vsub.s32 %v531_v5, %v1740_v8 }
  0xc1   : > { %476 = vbcast.lane.b32.xlu1 %v470_v19, 264 }
  0xc2   : > { %995 = vmatmul.mubr.msk.f32.vlgmr.msra.gmra.mrb[0].mxu0 %vm328_vm2, %v313_v36 }
  0xc5   : > { %487 = vbcast.lane.b32.xlu1 %v481_v24, 264 }
  0xc9   : > { %498 = vbcast.lane.b32.xlu1 %v492_v29, 264 }
  0xcd   : > { %509 = vbcast.lane.b32.xlu1 %v1770_v38, 264 }
 0x117   : > { %v1773_v44 = vpop.permute.xlu1 %432  ;;  %v429_v63 = vpop.permute.xlu0 %428 }
 0x118   : > { %v512_v16 = vsub.f32 %v1763_v34, %v1773_v44  ;;  %v511_v18 = vsub.f32 %v1761_v33, %v429_v63 }
 0x11b   : > { %v1775_v48 = vpop.permute.xlu1 %439  ;;  %v473_v3 = vpop.permute.xlu0 %472 }
 0x11c   : > { %v513_v20 = vsub.f32 %v1761_v33, %v1775_v48  ;;  %v519_v31 = vsub.f32 %v1761_v33, %v473_v3 }
 0x11f   : > { %v1777_v51 = vpop.permute.xlu1 %443  ;;  %v1790_v14 = vpop.permute.xlu0 %483 }
 0x120   : > { %v514_v8 = vsub.f32 %v1763_v34, %v1777_v51 }
 0x123   : > { %v1779_v52 = vpop.permute.xlu1 %450  ;;  %v495_v28 = vpop.permute.xlu0 %494 }
 0x124   : > { %v515_v21 = vsub.f32 %v1761_v33, %v1779_v52 }
 0x127   : > { %v1781_v56 = vpop.permute.xlu1 %454 }
 0x128   : > { %v516_v22 = vsub.f32 %v1763_v34, %v1781_v56 }
 0x12b   : > { %v1783_v60 = vpop.permute.xlu1 %461 }
 0x12c   : > { %v517_v29 = vsub.f32 %v1761_v33, %v1783_v60 }
 0x12f   : > { %v1785_v62 = vpop.permute.xlu1 %465 }
 0x130   : > { %v518_v30 = vsub.f32 %v1763_v34, %v1785_v62 }
 0x133   : > { %v477_v2 = vpop.permute.xlu1 %476 }
 0x134   : > { %v520_v26 = vsub.f32 %v1763_v34, %v477_v2 }
 0x137   : > { %v1787_v9 = vpop.permute.xlu1 %487 }
 0x138   : > { %v522_v32 = vsub.f32 %v1763_v34, %v1787_v9 }
 0x13b   : > { %v499_v23 = vpop.permute.xlu1 %498 }
 0x13f   : > { %v510_v52 = vpop.permute.xlu1 %509 }
 0x140   : > { %v526_v62 = vsub.f32 %v1763_v34, %v510_v52 }
 0x195   : > { %v398_v39 = vpop.f32.mrb[0].mxu0 }
 0x196   : > { %v402_v40 = vrot.slane %v398_v39, 4  ;;  %v996_v41 = vpop.f32.mrb[1].mxu0 }
 0x197   : > { %v521_v41 = vsub.f32 %v1761_v33, %v1790_v14 }
 0x198   : > { %v403_v42 = vmax.f32 %v398_v39, %v402_v40 }
 0x19a   : > { %v404_v43 = vrot.slane %v403_v42, 2 }
 0x19c   : > { %v405_v45 = vmax.f32 %v403_v42, %v404_v43  ;;  %v524_v42 = vsub.f32 %v1763_v34, %v499_v23  ;;  %v523_v43 = vsub.f32 %v1761_v33, %v495_v28 }
 0x19e   : > { %v406_v46 = vrot.slane %v405_v45, 1 }
 0x1a0   : > { %v407_v47 = vmax.f32 %v405_v45, %v406_v46 }
 0x1a2   : > { %v408_v49 = vsub.f32 %v398_v39, %v407_v47 }
 0x1a4   : > { %v409_v50 = vmul.f32 1.442695, %v408_v49 }
 0x1a6   : > { %1156 = vpow2.f32 %v409_v50 }
 0x1b0   : > { %v1157_v53 = vpop.eup %1156 }
 0x1b1   : > { %v411_v54 = vrot.slane %v1157_v53, 4 }
 0x1b3   : > { %v412_v55 = vadd.f32 %v1157_v53, %v411_v54 }
 0x1b5   : > { %v413_v57 = vrot.slane %v412_v55, 2 }
 0x1b7   : > { %v414_v58 = vadd.f32 %v413_v57, %v412_v55 }
 0x1b9   : > { %v415_v59 = vrot.slane %v414_v58, 1 }
 0x1bb   : > { %v416_v61 = vadd.f32 %v415_v59, %v414_v58 }
 0x1bd   : > { %1158 = vrcp.f32 %v416_v61 }
 0x1c7   : > { %v1159_v4 = vpop.eup %1158 }
 0x1c8   : > { %v418_v6 = vmul.f32 %v1159_v4, %v416_v61 }
 0x1ca   : > { %v419_v7 = vsub.f32 2.0, %v418_v6 }
 0x1cc   : > { %v420_v13 = vmul.f32 %v1159_v4, %v419_v7 }
 0x1ce   : > { %v421_v15 = vmul.f32 %v1157_v53, %v420_v13 }
 0x1d0   : > { %422 = vst [vmem:[%s1734_s30] sm:$0xff] %v421_v15  ;;  %v535_v17 = vrot.slane %v421_v15, %v534_v12  ;;  %v528_v19 = vcombine.high %v421_v15, %v421_v15  ;;  %719 = vadd.xlane.f32.xlu0 %v421_v15  ;;  %1002 = vmatmul.mubr.f32.vlgmr.msra.gmra.mrb[0].mxu1 %v421_v15 }
 0x1d2   : > { %v551_v24 = vrot.slane %v535_v17, %v534_v12  ;;  %v543_v25 = vcombine.high %v535_v17, %v535_v17  ;;  %v542_v27 = vrot.slane %v528_v19, %v534_v12 }
 0x1d4   : > { %v580_v35 = vrot.slane %v551_v24, %v1745_v11  ;;  %v565_v36 = vrot.slane %v543_v25, %v534_v12  ;;  %v573_v37 = vcombine.high %v551_v24, %v551_v24  ;;  %v558_v39 = vrot.slane %v542_v27, %v534_v12 }
 0x1d5   : > { %v544_v40 = vcombine.high %v542_v27, %v542_v27 }
 0x1d6   : > { %v618_v44 = vmul.f32 %v580_v35, %v512_v16  ;;  %v584_v45 = vrot.slane %v565_v36, %v1745_v11  ;;  %v588_v46 = vrot.slane %v573_v37, %v1745_v11  ;;  %v575_v47 = vcombine.high %v565_v36, %v565_v36 }
 0x1d7   : > { %v617_v48 = vmul.f32 %v580_v35, %v511_v18  ;;  %v596_v49 = vrot.slane %v558_v39, %v1745_v11  ;;  %v572_v50 = vrot.slane %v544_v40, %v534_v12  ;;  %v574_v51 = vcombine.high %v558_v39, %v558_v39 }
 0x1d8   : > { %634 = vst [vmem:[%s1736_s15 + $0x8] sm:$0xff] %v618_v44  ;;  %v619_v53 = vmul.f32 %v584_v45, %v513_v20  ;;  %v620_v54 = vmul.f32 %v584_v45, %v514_v8  ;;  %v621_v55 = vmul.f32 %v588_v46, %v515_v21  ;;  %v622_v56 = vmul.f32 %v588_v46, %v516_v22 }
 0x1d9   : > { %v592_v57 = vrot.slane %v575_v47, %v1745_v11  ;;  %633 = vst [vmem:[%s1736_s15] sm:$0xff] %v617_v48  ;;  %v626_v58 = vmul.f32 %v596_v49, %v520_v26  ;;  %v625_v59 = vmul.f32 %v596_v49, %v519_v31  ;;  %v600_v60 = vrot.slane %v572_v50, %v1745_v11 }
 0x1da   : > { %635 = vst [vmem:[%s1736_s15 + $0x10] sm:$0xff] %v619_v53  ;;  %636 = vst [vmem:[%s1736_s15 + $0x18] sm:$0xff] %v620_v54  ;;  %v604_v61 = vrot.slane %v574_v51, %v1745_v11  ;;  %v576_v63 = vcombine.high %v572_v50, %v572_v50 }
 0x1db   : > { %637 = vst [vmem:[%s1736_s15 + $0x20] sm:$0xff] %v621_v55  ;;  %638 = vst [vmem:[%s1736_s15 + $0x28] sm:$0xff] %v622_v56  ;;  %v623_v0 = vmul.f32 %v592_v57, %v517_v29  ;;  %v624_v1 = vmul.f32 %v592_v57, %v518_v30  ;;  %v628_v2 = vmul.f32 %v600_v60, %v522_v32 }
 0x1dc   : > { %642 = vst [vmem:[%s1736_s15 + $0x48] sm:$0xff] %v626_v58  ;;  %641 = vst [vmem:[%s1736_s15 + $0x40] sm:$0xff] %v625_v59  ;;  %v627_v3 = vmul.f32 %v600_v60, %v521_v41  ;;  %v630_v4 = vmul.f32 %v604_v61, %v524_v42  ;;  %v629_v5 = vmul.f32 %v604_v61, %v523_v43 }
 0x1dd   : > { %v608_v6 = vrot.slane %v576_v63, %v1745_v11  ;;  %639 = vst [vmem:[%s1736_s15 + $0x30] sm:$0xff] %v623_v0  ;;  %640 = vst [vmem:[%s1736_s15 + $0x38] sm:$0xff] %v624_v1  ;;  %v721_v11 = vld [vmem:[#allocation2] sm:$0xff] }
 0x1de   : > { %644 = vst [vmem:[%s1736_s15 + $0x58] sm:$0xff] %v628_v2  ;;  %643 = vst [vmem:[%s1736_s15 + $0x50] sm:$0xff] %v627_v3 }
 0x1df   : > { %646 = vst [vmem:[%s1736_s15 + $0x68] sm:$0xff] %v630_v4  ;;  %645 = vst [vmem:[%s1736_s15 + $0x60] sm:$0xff] %v629_v5  ;;  %v632_v34 = vmul.f32 %v608_v6, %v526_v62 }
 0x1e1   : > { %648 = vst [vmem:[%s1736_s15 + $0x78] sm:$0xff] %v632_v34 }
 0x1e6   : > { %505 = vbcast.lane.b32.xlu0 %v1770_v38, 256 }
 0x25d   : > { %v720_v7 = vpop.xlane.xlu0 %719 }
 0x25e   : > { %v722_v14 = vmul.f32 %v720_v7, %v1742_v10 }
 0x261   : > { %v506_v9 = vpop.permute.xlu0 %505 }
 0x262   : > { %v525_v12 = vsub.f32 %v1761_v33, %v506_v9 }
 0x264   : > { %v631_v13 = vmul.f32 %v608_v6, %v525_v12 }
 0x266   : > { %647 = vst [vmem:[%s1736_s15 + $0x70] sm:$0xff] %v631_v13 }
 0x2a2   : > { %729 = sbr.rel (%p973_p2) target bundleno = 689 (0x2b1), region = 52 }
 0x2a3   : > { %v715_v15 = vpop.f32.mrb[0].mxu1 }
 0x2a4   : > { %v723_v16 = vsub.f32 %v715_v15, %v722_v14  ;;  %v1003_v17 = vpop.f32.mrb[1].mxu1 }
 0x2a6   : > { %v724_v18 = vadd.f32 %v723_v16, %v721_v11 }
 0x2a8   : > { %725 = vst.msk [vmem:[#allocation2] sm:$0xff] %vm328_vm2, %v724_v18 }
 0x2af   : > { %v730_v19 = vld [vmem:[#allocation2] sm:$0xff] }
 0x2b0   : > { %731 = vst.msk [vmem:[%s2005_s8] sm:$0xff] %vm328_vm2, %v730_v19 }
 0x2b1 PF: > { %s737_s17 = sand.u32 1, %s1541_s29   ;;  %s979_s1 = sshll.u32 %s1424_s25, 5 }
 0x2b2   : > { %s769_s10 = sadd.s32 %s1420_s24, %s979_s1  ;;  %s772_s21 = sshll.u32 %s1736_s15, 4  ;;  %s1858_s21 = int_to_ptr.vmem [resolvable:$true] %s772_s21 }
 0x2b3   : > { %s980_s6 = sshll.u32 %s769_s10, 7  ;;  %s2041_s4 = sld [smem:[#allocation30_spill]] }
 0x2b4   : > { %s1860_s14 = scalar_lea.sflag [#allocation11], %s737_s17  ;;  %s1246_s18 = scalar_lea.vmem %s1858_s21, 2048 }
 0x2b5   : > { %p1247_p10 = scmp.ne.s32.totalorder %s1858_s21, %s1246_s18  ;;  %p2042_p8 = scmp.ne.s32.totalorder %s2018_s9, 0 }
 0x2b6   : > { %s1449_s29 = smov [#allocation10]  }
 0x2b7   : > { %p1248_p4 = pnand %p1247_p10, %p2042_p8  ;;  %s1250_s1 = sshll.u32 %s1449_s29, 4  ;;  %s1251_s1 = int_to_ptr.vmem [resolvable:$false] %s1250_s1 }
 0x2b8   : > { %s1252_s15 = scalar_lea.vmem %s1251_s1, 4096  ;;  %p1253_p3 = scmp.lt.s32.totalorder %s1858_s21, %s1251_s1 }
 0x2b9   : > { %s1856_s2 = scalar_lea.hbm %s2041_s4, %s980_s6  ;;  %p1249_p7 = pneg %p1248_p4 }
 0x2ba   : > { %p1254_p6 = scmp.lt.s32.totalorder %s1252_s15, %s1246_s18 }
 0x2bc   : > { %p1255_p9 = por %p1254_p6, %p1253_p3 }
 0x2be   : > { %p1256_p11 = pnand %p1255_p9, %p1249_p7 }
 0x2c0   : > { %1259 = shalt.err (!%p1256_p11)
}
 0x2c1   : > { %s1260_s17 = scalar_lea.hbm %s1856_s2, 2048  ;;  %s1264_s11 = scalar_lea.hbm %s2041_s4, 8192 }
 0x2c2   : > { %p1261_p0 = scmp.ne.s32.totalorder %s1856_s2, %s1260_s17  ;;  %p1265_p1 = scmp.lt.u32.totalorder %s1856_s2, %s2041_s4 }
 0x2c3   : > { %p1266_p13 = scmp.lt.u32.totalorder %s1264_s11, %s1260_s17  ;;  %p1268_p10 = scmp.lt.u32.totalorder %s1260_s17, %s1856_s2 }
 0x2c4   : > { %p1262_p5 = pnand %p1261_p0, %p2042_p8 }
 0x2c5   : > { %p1267_p2 = por %p1266_p13, %p1265_p1 }
 0x2c6   : > { %p1263_p12 = pneg %p1262_p5 }
 0x2c7   : > { %p1269_p4 = por %p1268_p10, %p1267_p2 }
 0x2c9   : > { %p1270_p7 = pnand %p1269_p4, %p1263_p12 }
 0x2cb   : > { %1273 = shalt.err (!%p1270_p7)
}
 0x2cc   : > { %s1450_s18 = smov 128   ;;  %s1451_s1 = smov 256  }
 0x2cd   : > { %s1452_s15 = smov 8   ;;  %s977_s10 = sshll.u32 %s1424_s25, 1 }
 0x2ce   : > { %1021 = dma.vmem_to_hbm [thread:$0]  (%p2042_p8), %s1858_s21, 2048, %s1856_s2, %s1860_s14, %s1450_s18, %s1451_s1, %s1452_s15  }
 0x2cf   : > { %s758_s17 = sshll.u32 %s1734_s30, 4  ;;  %s754_s6 = sadd.s32 %s1420_s24, %s977_s10  ;;  %s1887_s17 = int_to_ptr.vmem [resolvable:$true] %s758_s17 }
 0x2d0   : > { %s978_s11 = sshll.u32 %s754_s6, 7  ;;  %s981_s13 = sshll.u32 %s1424_s25, 7 }
 0x2d1   : > { %s1893_s0 = scalar_lea.hbm %s1986_s3, %s978_s11  ;;  %s1898_s27 = scalar_lea.hbm %s1988_s5, %s981_s13 }
 0x2d2   : > { %s733_s21 = scalar_lea.sflag [#allocation5], %s1717_s12  ;;  %s1274_s30 = scalar_lea.vmem %s1887_s17, 128 }
 0x2d3   : > { %p1275_p3 = scmp.ne.s32.totalorder %s1887_s17, %s1274_s30  ;;  %s1453_s24 = smov [#allocation9]  }
 0x2d4   : > { %s1278_s2 = sshll.u32 %s1453_s24, 4  ;;  %s1279_s2 = int_to_ptr.vmem [resolvable:$false] %s1278_s2 }
 0x2d5   : > { %p1276_p6 = pnand %p1275_p3, %p2042_p8  ;;  %s1280_s25 = scalar_lea.vmem %s1279_s2, 256 }
 0x2d6   : > { %p1281_p11 = scmp.lt.s32.totalorder %s1887_s17, %s1279_s2  ;;  %p1282_p0 = scmp.lt.s32.totalorder %s1280_s25, %s1274_s30 }
 0x2d7   : > { %p1277_p9 = pneg %p1276_p6 }
 0x2d8   : > { %p1283_p5 = por %p1282_p0, %p1281_p11 }
 0x2da   : > { %p1284_p12 = pnand %p1283_p5, %p1277_p9 }
 0x2dc   : > { %1287 = shalt.err (!%p1284_p12)
}
 0x2dd   : > { %s1288_s4 = scalar_lea.hbm %s1893_s0, 128  ;;  %s1292_s8 = scalar_lea.hbm %s1986_s3, 512 }
 0x2de   : > { %p1289_p1 = scmp.ne.s32.totalorder %s1893_s0, %s1288_s4  ;;  %p1293_p10 = scmp.lt.u32.totalorder %s1893_s0, %s1986_s3 }
 0x2df   : > { %p1294_p4 = scmp.lt.u32.totalorder %s1292_s8, %s1288_s4  ;;  %p1296_p3 = scmp.lt.u32.totalorder %s1288_s4, %s1893_s0 }
 0x2e0   : > { %p1290_p13 = pnand %p1289_p1, %p2042_p8 }
 0x2e1   : > { %p1295_p7 = por %p1294_p4, %p1293_p10 }
 0x2e2   : > { %p1291_p2 = pneg %p1290_p13 }
 0x2e3   : > { %p1297_p6 = por %p1296_p3, %p1295_p7 }
 0x2e5   : > { %p1298_p9 = pnand %p1297_p6, %p1291_p2 }
 0x2e7   : > { %1301 = shalt.err (!%p1298_p9)
}
 0x2e8   : > { %s2043_s15 = sld [smem:[#allocation23_spill]]  ;;  %s2044_s10 = scalar_lea.vmem [#allocation12], %s1732_s16 }
 0x2e9   : > { %1020 = dma.vmem_to_hbm [thread:$0]  (%p2042_p8), %s1887_s17, 128, %s1893_s0, %s733_s21  }
 0x2ea   : > { %s788_s6 = sshll.u32 %s2044_s10, 4  ;;  %s1454_s13 = smov [#allocation12]   ;;  %s789_s6 = int_to_ptr.vmem [resolvable:$true] %s788_s6 }
 0x2eb   : > { %s1302_s11 = scalar_lea.vmem %s789_s6, 128  ;;  %s1306_s29 = sshll.u32 %s1454_s13, 4  ;;  %s1307_s29 = int_to_ptr.vmem [resolvable:$false] %s1306_s29 }
 0x2ec   : > { %p1303_p11 = scmp.ne.s32.totalorder %s789_s6, %s1302_s11  ;;  %s1308_s30 = scalar_lea.vmem %s1307_s29, 256 }
 0x2ed   : > { %p1309_p1 = scmp.lt.s32.totalorder %s789_s6, %s1307_s29  ;;  %p1310_p13 = scmp.lt.s32.totalorder %s1308_s30, %s1302_s11 }
 0x2ee   : > { %p2045_p0 = scmp.ne.s32.totalorder %s2043_s15, 0 }
 0x2ef   : > { %p1311_p2 = por %p1310_p13, %p1309_p1 }
 0x2f0   : > { %p1304_p5 = pnand %p1303_p11, %p2045_p0 }
 0x2f2   : > { %p1305_p12 = pneg %p1304_p5 }
 0x2f4   : > { %p1312_p10 = pnand %p1311_p2, %p1305_p12 }
 0x2f6   : > { %1315 = shalt.err (!%p1312_p10)
}
 0x2f7   : > { %s1316_s0 = scalar_lea.hbm %s1898_s27, 128  ;;  %s1320_s17 = scalar_lea.hbm %s1988_s5, 256 }
 0x2f8   : > { %p1317_p8 = scmp.ne.s32.totalorder %s1898_s27, %s1316_s0  ;;  %p1321_p3 = scmp.lt.u32.totalorder %s1898_s27, %s1988_s5 }
 0x2f9   : > { %p1322_p6 = scmp.lt.u32.totalorder %s1320_s17, %s1316_s0  ;;  %p1324_p11 = scmp.lt.u32.totalorder %s1316_s0, %s1898_s27 }
 0x2fa   : > { %p1318_p4 = pnand %p1317_p8, %p2045_p0 }
 0x2fb   : > { %p1323_p9 = por %p1322_p6, %p1321_p3 }
 0x2fc   : > { %p1319_p7 = pneg %p1318_p4 }
 0x2fd   : > { %p1325_p5 = por %p1324_p11, %p1323_p9 }
 0x2ff   : > { %p1326_p12 = pnand %p1325_p5, %p1319_p7 }
 0x301   : > { %1329 = shalt.err (!%p1326_p12)
}
 0x302   : > { %1022 = dma.vmem_to_hbm [thread:$0]  (%p2045_p0), %s789_s6, 128, %s1898_s27, %s1860_s14  }
 0x303 PF: > { %s2046_s2 = sld [smem:[#allocation21_spill]]  ;;  %s2047_s25 = sld [smem:[#allocation18_spill]] }
 0x304   : > { %s2048_s4 = sld [smem:[#allocation22_spill]] }
 0x309   : > { %p1052_p1 = scmp.ge.s32.totalorder %s2046_s2, 2  ;;  %s800_s28 = sand.u32 1, %s2047_s25  }
 0x30a   : > { %p2049_p13 = scmp.ne.s32.totalorder %s2048_s4, 0  ;;  %s801_s12 = scalar_lea.sflag [#allocation5], %s800_s28 }
 0x30c   : > { %p1038_p2 = pnand %p1052_p1, %p2049_p13 }
 0x30e   : > { %1383 = dma.done.wait (!%p1038_p2), %s801_s12, 128  }
 0x30f   : > { %1385 = vsyncadd (!%p1038_p2), %s801_s12, 4294967168  ;;  %s2050_s8 = sadd.s32 4294967294, %s2046_s2  }
 0x310   : > { %s809_s18 = sand.u32 1, %s2050_s8  }
 0x311   : > { %s810_s1 = scalar_lea.sflag [#allocation11], %s809_s18 }
 0x312   : > { %1387 = dma.done.wait (!%p1038_p2), %s810_s1, 2048  }
 0x313   : > { %1389 = vsyncadd (!%p1038_p2), %s810_s1, 4294965248  ;;  %s2051_s15 = sld [smem:[#allocation24_spill]] }
 0x319   : > { %p2052_p10 = scmp.ne.s32.totalorder %s2051_s15, 0 }
 0x31b   : > { %p1044_p0 = pnand %p1052_p1, %p2052_p10 }
 0x31d   : > { %1391 = dma.done.wait (!%p1044_p0), %s810_s1, 128  }
 0x31e   : > { %1393 = vsyncadd (!%p1044_p0), %s810_s1, 4294967168  ;;  %s26_s28 = sadd.s32 1, %s2046_s2   ;;  %s2053_s24 = sld [smem:[#allocation19_spill]] }
 0x31f   : > { %p23_p8 = scmp.ge.s32.totalorder %s26_s28, 6   ;;  %s2054_s25 = sld [smem:[#allocation20_spill]] }
 0x320   : > { %s2055_s27 = sld [smem:[#allocation25_spill]]  ;;  %s2056_s14 = sld [smem:[#allocation26_spill]] }
 0x321   : > { %s2057_s18 = smov %s1400_s19  ;;  %s2058_s19 = smov %s1404_s20 }
 0x322   : > { %s2059_s20 = smov %s1679_s26  ;;  %s2060_s21 = smov %s1412_s22 }
 0x323   : > { %s2061_s22 = smov %s1416_s23  ;;  %s2062_s23 = smov %s1684_s7 }
 0x324   :  { %25 = sbr.rel (!%p23_p8) target bundleno = 17 (0x11), region = 125 }
 0x326   : > { %s2063_s26 = smov %s2055_s27  ;;  %s2064_s27 = smov %s2056_s14 }
 0x32b   :  { %824 = vsyncpa [#allocation4], 1 }
 0x32c   :  { %826 = vsyncpa [#allocation4 + $0x1], 1 }
 0x32d   :  { %827 = vsyncpa [#allocation7], 1 }
 0x32e   :  { %828 = vsyncpa [#allocation5], 1 }
 0x32f   :  { %830 = vsyncpa [#allocation5 + $0x1], 1 }
 0x330   :  { %831 = vsyncpa [#allocation11], 1 }
 0x331   :  { %833 = vsyncpa [#allocation11 + $0x1], 1 }

</bundles_post_ra>
